<compile_context>
chip_gen: v6e
topology: v6e:2x2x1
jax: 0.10.0
libtpu: 0.0.40
codegen_flags: <defaults>
</compile_context>

<pallas_src>
import jax
import jax.numpy as jnp
from jax import lax
from jax.experimental import pallas as pl
from jax.experimental.pallas import tpu as pltpu  # noqa: F401  (TPU tuning hooks)

B = 2            # batch
E = 8            # entities (1 ego + 7 others)
IN = 8           # per-entity input feature size
F = 64           # feature_size / MLP hidden size
HEADS = 4
DPH = F // HEADS
PRESENCE_IDX = 0
NEG = -1e9

LANES = 2 * F            # 128 lanes for both packed weight arrays

# f32 header layout: (HDR_ROWS, LANES) = (16, 128), 8 KiB.
H_W1 = 0                 # rows 0:8    [we1 | wo1]
H_B1 = IN                # row 8       [be1 | bo1]
H_B2 = IN + 1            # row 9       [be2 | bo2]
H_HEAD = IN + 2          # rows 10:14  head-indicator (HEADS, F) in lanes 0:F
H_SEL = H_HEAD + HEADS   # rows 14:16  batch selector (B, B*E) in lanes 0:B*E
HDR_ROWS = 16

# bf16 slab layout: (SLAB_ROWS, LANES) = (256, 128), 64 KiB. All 16-row aligned.
S_W2 = 0                 # rows 0:128   blockdiag(we2, wo2)
S_KV = 2 * F             # rows 128:192 [wk | wv]
S_WCQ = 3 * F            # rows 192:256 [wc | wq / sqrt(DPH)]
SLAB_ROWS = 4 * F

_PF = dict(preferred_element_type=jnp.float32)
_HI = dict(preferred_element_type=jnp.float32, precision=lax.Precision.HIGHEST)


def _ego_attention_kernel(x_ref, hdr_ref, slab_ref, out_ref):
    f32 = jnp.float32
    x3 = x_ref[...]                                        # (B, E, IN)
    x2 = x3.reshape(B * E, IN)                             # (16, 8)

    w1 = hdr_ref[H_W1:H_W1 + IN, :]                        # (8, 128)
    b1 = hdr_ref[H_B1:H_B1 + 1, :]                         # (1, 128)
    b2 = hdr_ref[H_B2:H_B2 + 1, :]                         # (1, 128)
    hexp = hdr_ref[H_HEAD:H_HEAD + HEADS, 0:F]             # (4, 64)  0/1 constant
    sel = hdr_ref[H_SEL:H_SEL + B, 0:B * E]                # (2, 16)  0/1 constant

    w2 = slab_ref[S_W2:S_W2 + 2 * F, :].astype(f32)        # (128, 128)
    wkv = slab_ref[S_KV:S_KV + F, :].astype(f32)           # (64, 128) [wk | wv]
    wcq = slab_ref[S_WCQ:S_WCQ + F, :].astype(f32)         # (64, 128) [wc | wq*s]

    # Fused embedding MLPs: lanes 0:F run the ego MLP, lanes F:2F the "others"
    # MLP.  Every row computes both; the per-row select keeps the right half
    # (entity 0 of each batch element is the ego).
    h1 = jnp.maximum(jnp.dot(x2, w1, **_PF) + b1, 0.0)     # (16, 128)
    h2 = jnp.maximum(jnp.dot(h1, w2, **_PF) + b2, 0.0)     # (16, 128)

    ent = lax.broadcasted_iota(jnp.int32, (B * E, 1), 0) % E
    emb = jnp.where(ent == 0, h2[:, 0:F], h2[:, F:2 * F])  # (16, 64)

    # Fused K/V projection; Q projection pre-scaled by 1/sqrt(DPH) at pack time
    # (non-ego Q rows are free MXU padding and are simply unused).
    kv = jnp.dot(emb, wkv, **_PF)                          # (16, 128)
    k3 = kv[:, 0:F].reshape(B, E, F)                       # (B, E, F)
    v = kv[:, F:2 * F]                                     # (16, 64)
    q_all = jnp.dot(emb, wcq[:, F:2 * F], **_PF)           # (16, 64)
    q_ego = q_all.reshape(B, E, F)[:, 0:1, :]              # (B, 1, F)

    # Per-head scores: elementwise K*Q then one NT matmul against the packed
    # 0/1 head-indicator constant (contracting on the 64-dim).
    kq = (k3 * q_ego).reshape(B * E, F)                    # (16, 64)
    scores = lax.dot_general(kq, hexp, (((1,), (1,)), ((), ())),
                             preferred_element_type=f32)   # (16, HEADS)
    scores = scores.reshape(B, E, HEADS)

    presence = x3[:, :, PRESENCE_IDX:PRESENCE_IDX + 1]     # (B, E, 1)
    scores = jnp.where(presence < 0.5, NEG, scores)        # masked_fill

    # Stable softmax over entities (axis 1). nn.Dropout(0) is the identity.
    m = jnp.max(scores, axis=1, keepdims=True)
    p = jnp.exp(scores - m)
    denom = jnp.sum(p, axis=1, keepdims=True)
    p = p * pl.reciprocal(denom, approx=True)              # (B, E, HEADS)

    # Expand p across each head's feature lanes with the same 0/1 constant,
    # weight V, and reduce over entities with the batch-selector matmul (MXU,
    # not an XLU cross-sublane sum).
    p_exp = jnp.dot(p.reshape(B * E, HEADS), hexp, **_PF)  # (16, 64)
    attn = jnp.dot(sel, p_exp * v, **_PF)                  # (B, 64)

    # attention_combine + residual with the ego embedding, averaged.  wcq lanes
    # F:2F hold the (scaled) query weight, so output lanes F:2F are scratch and
    # the store is still a full 128-lane unmasked vst; the wrapper keeps 0:F.
    ego_rows = h2.reshape(B, E, 2 * F)[:, 0:1, :].reshape(B, 2 * F)   # (B, 2F)
    out_ref[...] = (jnp.dot(attn, wcq, **_PF) + ego_rows) * 0.5


def pack_params(params):
    """Pack all 12 parameter tensors ONCE into (f32 header, bf16 slab)."""
    we1, be1, we2, be2, wo1, bo1, wo2, bo2, wk, wv, wq, wc = params
    f32 = jnp.float32
    zf = jnp.zeros((F, F), f32)

    header = jnp.zeros((HDR_ROWS, LANES), f32)
    header = header.at[H_W1:H_W1 + IN, :].set(
        jnp.concatenate([we1, wo1], axis=1).astype(f32))
    header = header.at[H_B1:H_B1 + 1, :].set(
        jnp.concatenate([be1, bo1], axis=1).astype(f32))
    header = header.at[H_B2:H_B2 + 1, :].set(
        jnp.concatenate([be2, bo2], axis=1).astype(f32))
    hh = jnp.arange(HEADS, dtype=jnp.int32)[:, None]
    ff = jnp.arange(F, dtype=jnp.int32)[None, :] // DPH
    header = header.at[H_HEAD:H_HEAD + HEADS, 0:F].set((hh == ff).astype(f32))
    bb = jnp.arange(B, dtype=jnp.int32)[:, None]
    rr = jnp.arange(B * E, dtype=jnp.int32)[None, :] // E
    header = header.at[H_SEL:H_SEL + B, 0:B * E].set((bb == rr).astype(f32))

    w2 = jnp.concatenate([jnp.concatenate([we2, zf], axis=1),
                          jnp.concatenate([zf, wo2], axis=1)], axis=0)   # (2F, 2F)
    wkv = jnp.concatenate([wk, wv], axis=1)                              # (F, 2F)
    wcq = jnp.concatenate([wc, wq / jnp.sqrt(f32(DPH))], axis=1)         # (F, 2F)
    slab = jnp.concatenate([w2, wkv, wcq], axis=0).astype(jnp.bfloat16)  # (4F, 2F)

    assert header.shape == (HDR_ROWS, LANES)
    assert slab.shape == (SLAB_ROWS, LANES)
    return header, slab


_COST = pl.CostEstimate(
    flops=1_003_520,
    transcendentals=B * E * HEADS + B * HEADS,   # exp + approx reciprocal
    bytes_accessed=(B * E * IN * 4 + HDR_ROWS * LANES * 4
                    + SLAB_ROWS * LANES * 2 + B * 2 * F * 4))


@jax.jit
def ego_attention_network(x, header, slab):
    """x: (B, E, IN) f32; header/slab: pre-packed weights (pack_params)."""
    out = pl.pallas_call(
        _ego_attention_kernel,
        out_shape=jax.ShapeDtypeStruct((B, 2 * F), jnp.float32),
        in_specs=[pl.BlockSpec((B, E, IN), lambda: (0, 0, 0)),
                  pl.BlockSpec((HDR_ROWS, LANES), lambda: (0, 0)),
                  pl.BlockSpec((SLAB_ROWS, LANES), lambda: (0, 0))],
        out_specs=pl.BlockSpec((B, 2 * F), lambda: (0, 0)),
        cost_estimate=_COST,
    )(x, header, slab)
    return out[:, :F]


def reference(x, params):
    """Pure-JAX ground truth at HIGHEST precision (matches the torch module)."""
    we1, be1, we2, be2, wo1, bo1, wo2, bo2, wk, wv, wq, wc = params
    ego = x[:, 0:1, :]
    others = x[:, 1:, :]
    mask = x[:, :, PRESENCE_IDX:PRESENCE_IDX + 1] < 0.5

    def mlp(h, w1, b1, w2, b2):
        h = jax.nn.relu(jnp.dot(h, w1, **_HI) + b1)
        h = jax.nn.relu(jnp.dot(h, w2, **_HI) + b2)
        return h

    ego_e = mlp(ego, we1, be1, we2, be2)
    oth_e = mlp(others, wo1, bo1, wo2, bo2)
    allx = jnp.concatenate([ego_e, oth_e], axis=1)
    Kx = jnp.dot(allx, wk, **_HI).reshape(B, E, HEADS, DPH).transpose(0, 2, 1, 3)
    Vx = jnp.dot(allx, wv, **_HI).reshape(B, E, HEADS, DPH).transpose(0, 2, 1, 3)
    Qx = jnp.dot(ego_e, wq, **_HI).reshape(B, 1, HEADS, DPH).transpose(0, 2, 1, 3)
    scores = jnp.einsum('bhqd,bhkd->bhqk', Qx, Kx,
                        precision=lax.Precision.HIGHEST) / jnp.sqrt(jnp.float32(DPH))
    scores = jnp.where(mask.reshape(B, 1, 1, E), NEG, scores)
    p = jax.nn.softmax(scores, axis=-1)
    out = jnp.einsum('bhqk,bhkd->bhqd', p, Vx, precision=lax.Precision.HIGHEST)
    out = out.transpose(0, 2, 1, 3).reshape(B, F)     # head-major flatten
    return (jnp.dot(out, wc, **_HI) + ego_e[:, 0, :]) / 2


if __name__ == "__main__":
    key = jax.random.PRNGKey(0)
    keys = jax.random.split(key, 14)

    def lin(k, shape, scale=0.2):
        return scale * jax.random.normal(k, shape, dtype=jnp.float32)

    params = (
        lin(keys[0], (IN, F)), lin(keys[1], (1, F), 0.1),   # ego_embedding layer 0
        lin(keys[2], (F, F)), lin(keys[3], (1, F), 0.1),    # ego_embedding layer 1
        lin(keys[4], (IN, F)), lin(keys[5], (1, F), 0.1),   # embedding layer 0
        lin(keys[6], (F, F)), lin(keys[7], (1, F), 0.1),    # embedding layer 1
        lin(keys[8], (F, F)),                               # key_all
        lin(keys[9], (F, F)),                               # value_all
        lin(keys[10], (F, F)),                              # query_ego
        lin(keys[11], (F, F)),                              # attention_combine
    )

    x = jax.random.normal(keys[12], (B, E, IN), dtype=jnp.float32)
    presence = (jax.random.uniform(keys[13], (B, E)) > 0.3).astype(jnp.float32)
    presence = presence.at[:, 0].set(1.0)                   # ego is always present
    x = x.at[:, :, PRESENCE_IDX].set(presence)

    # Weights are static: pack them ONCE, reuse across calls (per perf review).
    header, slab = jax.block_until_ready(pack_params(params))

    out = jax.block_until_ready(ego_attention_network(x, header, slab))
    ref = reference(x, params)
    assert out.shape == (B, F)
    # Tolerance covers default-precision MXU passes, bf16 weight storage and the
    # approximate EUP reciprocal; the ground-truth reference runs at HIGHEST, so
    # outputs will not bit-match it.
    if not jnp.allclose(out, ref, atol=2e-2, rtol=2e-2):
        raise AssertionError("Pallas kernel does not match JAX reference")
    print("KERNEL_OK")
</pallas_src>

<mosaic_0001>
module attributes {stable_mosaic.version = 11 : i64} {
  func.func @_ego_attention_kernel(%arg0: memref<2x8x8xf32, #tpu.memory_space<vmem>>, %arg1: memref<16x128xf32, #tpu.memory_space<vmem>>, %arg2: memref<256x128xbf16, #tpu.memory_space<vmem>>, %arg3: memref<2x128xf32, #tpu.memory_space<vmem>>) attributes {dimension_semantics = [], scalar_prefetch = 0 : i64, scratch_operands = 0 : i64, tpu.core_type = #tpu.core_type<tc>} {
    %c0 = arith.constant 0 : index
    %c0_0 = arith.constant 0 : index
    %c0_1 = arith.constant 0 : index
    %0 = vector.load %arg0[%c0, %c0_0, %c0_1] : memref<2x8x8xf32, #tpu.memory_space<vmem>>, vector<2x8x8xf32>
    %1 = vector.shape_cast %0 : vector<2x8x8xf32> to vector<16x8xf32>
    %c0_2 = arith.constant 0 : index
    %c0_3 = arith.constant 0 : index
    %2 = vector.load %arg1[%c0_2, %c0_3] : memref<16x128xf32, #tpu.memory_space<vmem>>, vector<8x128xf32>
    %c8 = arith.constant 8 : index
    %c0_4 = arith.constant 0 : index
    %3 = vector.load %arg1[%c8, %c0_4] : memref<16x128xf32, #tpu.memory_space<vmem>>, vector<1x128xf32>
    %c9 = arith.constant 9 : index
    %c0_5 = arith.constant 0 : index
    %4 = vector.load %arg1[%c9, %c0_5] : memref<16x128xf32, #tpu.memory_space<vmem>>, vector<1x128xf32>
    %c10 = arith.constant 10 : index
    %c0_6 = arith.constant 0 : index
    %5 = vector.load %arg1[%c10, %c0_6] : memref<16x128xf32, #tpu.memory_space<vmem>>, vector<4x64xf32>
    %c14 = arith.constant 14 : index
    %c0_7 = arith.constant 0 : index
    %6 = vector.load %arg1[%c14, %c0_7] : memref<16x128xf32, #tpu.memory_space<vmem>>, vector<2x16xf32>
    %c0_8 = arith.constant 0 : index
    %c0_9 = arith.constant 0 : index
    %7 = vector.load %arg2[%c0_8, %c0_9] : memref<256x128xbf16, #tpu.memory_space<vmem>>, vector<128x128xbf16>
    %8 = arith.extf %7 : vector<128x128xbf16> to vector<128x128xf32>
    %c128 = arith.constant 128 : index
    %c0_10 = arith.constant 0 : index
    %9 = vector.load %arg2[%c128, %c0_10] : memref<256x128xbf16, #tpu.memory_space<vmem>>, vector<64x128xbf16>
    %10 = arith.extf %9 : vector<64x128xbf16> to vector<64x128xf32>
    %c192 = arith.constant 192 : index
    %c0_11 = arith.constant 0 : index
    %11 = vector.load %arg2[%c192, %c0_11] : memref<256x128xbf16, #tpu.memory_space<vmem>>, vector<64x128xbf16>
    %12 = arith.extf %11 : vector<64x128xbf16> to vector<64x128xf32>
    %cst = arith.constant dense<0.000000e+00> : vector<16x128xf32>
    %13 = tpu.matmul %1, %2, %cst {dimension_numbers = #tpu.dot_dimension_numbers<[1], [0], [0], [1], [0, 0, 1, 1], [], []>} : vector<16x8xf32>, vector<8x128xf32>, vector<16x128xf32> -> vector<16x128xf32>
    %14 = vector.broadcast %3 : vector<1x128xf32> to vector<16x128xf32>
    %15 = arith.addf %13, %14 : vector<16x128xf32>
    %cst_12 = arith.constant 0.000000e+00 : f32
    %16 = vector.broadcast %cst_12 : f32 to vector<16x128xf32>
    %17 = arith.maximumf %15, %16 : vector<16x128xf32>
    %cst_13 = arith.constant dense<0.000000e+00> : vector<16x128xf32>
    %18 = tpu.matmul %17, %8, %cst_13 {dimension_numbers = #tpu.dot_dimension_numbers<[1], [0], [0], [1], [0, 0, 1, 1], [], []>} : vector<16x128xf32>, vector<128x128xf32>, vector<16x128xf32> -> vector<16x128xf32>
    %19 = vector.broadcast %4 : vector<1x128xf32> to vector<16x128xf32>
    %20 = arith.addf %18, %19 : vector<16x128xf32>
    %cst_14 = arith.constant 0.000000e+00 : f32
    %21 = vector.broadcast %cst_14 : f32 to vector<16x128xf32>
    %22 = arith.maximumf %20, %21 : vector<16x128xf32>
    %23 = tpu.iota {dimensions = array<i32: 0>} : vector<16x1xi32>
    %c8_i32 = arith.constant 8 : i32
    %c0_i32 = arith.constant 0 : i32
    %24 = arith.cmpi eq, %c8_i32, %c0_i32 : i32
    %c1_i32 = arith.constant 1 : i32
    %25 = arith.select %24, %c1_i32, %c8_i32 : i32
    %26 = vector.broadcast %25 : i32 to vector<16x1xi32>
    %27 = arith.remsi %23, %26 : vector<16x1xi32>
    %c0_i32_15 = arith.constant 0 : i32
    %28 = vector.broadcast %c0_i32_15 : i32 to vector<16x1xi32>
    %29 = arith.cmpi ne, %27, %28 : vector<16x1xi32>
    %c0_i32_16 = arith.constant 0 : i32
    %30 = vector.broadcast %c0_i32_16 : i32 to vector<16x1xi32>
    %31 = arith.cmpi slt, %27, %30 : vector<16x1xi32>
    %c0_i32_17 = arith.constant 0 : i32
    %32 = arith.cmpi slt, %25, %c0_i32_17 : i32
    %33 = vector.broadcast %32 : i1 to vector<16x1xi1>
    %34 = vector.broadcast %33 : vector<16x1xi1> to vector<16x1xi1>
    %35 = arith.xori %31, %34 : vector<16x1xi1>
    %36 = arith.andi %35, %29 : vector<16x1xi1>
    %37 = vector.broadcast %25 : i32 to vector<16x1xi32>
    %38 = arith.addi %27, %37 : vector<16x1xi32>
    %39 = arith.select %36, %38, %27 : vector<16x1xi1>, vector<16x1xi32>
    %c0_i32_18 = arith.constant 0 : i32
    %40 = vector.broadcast %c0_i32_18 : i32 to vector<16x1xi32>
    %41 = arith.cmpi eq, %39, %40 : vector<16x1xi32>
    %42 = vector.extract_strided_slice %22 {offsets = [0, 0], sizes = [16, 64], strides = [1, 1]} : vector<16x128xf32> to vector<16x64xf32>
    %43 = vector.extract_strided_slice %22 {offsets = [0, 64], sizes = [16, 64], strides = [1, 1]} : vector<16x128xf32> to vector<16x64xf32>
    %44 = vector.shape_cast %41 : vector<16x1xi1> to vector<16x1xi1>
    %45 = vector.broadcast %44 : vector<16x1xi1> to vector<16x64xi1>
    %46 = arith.select %45, %42, %43 : vector<16x64xi1>, vector<16x64xf32>
    %cst_19 = arith.constant dense<0.000000e+00> : vector<16x128xf32>
    %47 = tpu.matmul %46, %10, %cst_19 {dimension_numbers = #tpu.dot_dimension_numbers<[1], [0], [0], [1], [0, 0, 1, 1], [], []>} : vector<16x64xf32>, vector<64x128xf32>, vector<16x128xf32> -> vector<16x128xf32>
    %48 = vector.extract_strided_slice %47 {offsets = [0, 0], sizes = [16, 64], strides = [1, 1]} : vector<16x128xf32> to vector<16x64xf32>
    %49 = vector.shape_cast %48 : vector<16x64xf32> to vector<2x8x64xf32>
    %50 = vector.extract_strided_slice %47 {offsets = [0, 64], sizes = [16, 64], strides = [1, 1]} : vector<16x128xf32> to vector<16x64xf32>
    %51 = vector.extract_strided_slice %12 {offsets = [0, 64], sizes = [64, 64], strides = [1, 1]} : vector<64x128xf32> to vector<64x64xf32>
    %cst_20 = arith.constant dense<0.000000e+00> : vector<16x64xf32>
    %52 = tpu.matmul %46, %51, %cst_20 {dimension_numbers = #tpu.dot_dimension_numbers<[1], [0], [0], [1], [0, 0, 1, 1], [], []>} : vector<16x64xf32>, vector<64x64xf32>, vector<16x64xf32> -> vector<16x64xf32>
    %53 = vector.shape_cast %52 : vector<16x64xf32> to vector<2x8x64xf32>
    %54 = vector.extract_strided_slice %53 {offsets = [0, 0, 0], sizes = [2, 1, 64], strides = [1, 1, 1]} : vector<2x8x64xf32> to vector<2x1x64xf32>
    %55 = vector.broadcast %54 : vector<2x1x64xf32> to vector<2x8x64xf32>
    %56 = arith.mulf %49, %55 : vector<2x8x64xf32>
    %57 = vector.shape_cast %56 : vector<2x8x64xf32> to vector<16x64xf32>
    %cst_21 = arith.constant dense<0.000000e+00> : vector<16x4xf32>
    %58 = tpu.matmul %57, %5, %cst_21 {dimension_numbers = #tpu.dot_dimension_numbers<[1], [1], [0], [0], [0, 0, 1, 0], [], []>} : vector<16x64xf32>, vector<4x64xf32>, vector<16x4xf32> -> vector<16x4xf32>
    %59 = vector.shape_cast %58 : vector<16x4xf32> to vector<2x8x4xf32>
    %60 = vector.extract_strided_slice %0 {offsets = [0, 0, 0], sizes = [2, 8, 1], strides = [1, 1, 1]} : vector<2x8x8xf32> to vector<2x8x1xf32>
    %cst_22 = arith.constant 5.000000e-01 : f32
    %61 = vector.broadcast %cst_22 : f32 to vector<2x8x1xf32>
    %62 = arith.cmpf olt, %60, %61 : vector<2x8x1xf32>
    %cst_23 = arith.constant -1.000000e+09 : f32
    %63 = vector.shape_cast %62 : vector<2x8x1xi1> to vector<2x8x1xi1>
    %64 = vector.broadcast %63 : vector<2x8x1xi1> to vector<2x8x4xi1>
    %65 = vector.broadcast %cst_23 : f32 to vector<2x8x4xf32>
    %66 = arith.select %64, %65, %59 : vector<2x8x4xi1>, vector<2x8x4xf32>
    %cst_24 = arith.constant dense<0xFF800000> : vector<2x4xf32>
    %67 = vector.multi_reduction <maximumf>, %66, %cst_24 [1] : vector<2x8x4xf32> to vector<2x4xf32>
    %68 = vector.shape_cast %67 : vector<2x4xf32> to vector<2x1x4xf32>
    %69 = vector.broadcast %68 : vector<2x1x4xf32> to vector<2x8x4xf32>
    %70 = arith.subf %66, %69 : vector<2x8x4xf32>
    %71 = math.exp %70 : vector<2x8x4xf32>
    %cst_25 = arith.constant dense<0.000000e+00> : vector<2x4xf32>
    %72 = vector.multi_reduction <add>, %71, %cst_25 [1] : vector<2x8x4xf32> to vector<2x4xf32>
    %73 = vector.shape_cast %72 : vector<2x4xf32> to vector<2x1x4xf32>
    %74 = tpu.reciprocal %73 {approx = true} : vector<2x1x4xf32> -> vector<2x1x4xf32>
    %75 = vector.broadcast %74 : vector<2x1x4xf32> to vector<2x8x4xf32>
    %76 = arith.mulf %71, %75 : vector<2x8x4xf32>
    %77 = vector.shape_cast %76 : vector<2x8x4xf32> to vector<16x4xf32>
    %cst_26 = arith.constant dense<0.000000e+00> : vector<16x64xf32>
    %78 = tpu.matmul %77, %5, %cst_26 {dimension_numbers = #tpu.dot_dimension_numbers<[1], [0], [0], [1], [0, 0, 1, 1], [], []>} : vector<16x4xf32>, vector<4x64xf32>, vector<16x64xf32> -> vector<16x64xf32>
    %79 = arith.mulf %78, %50 : vector<16x64xf32>
    %cst_27 = arith.constant dense<0.000000e+00> : vector<2x64xf32>
    %80 = tpu.matmul %6, %79, %cst_27 {dimension_numbers = #tpu.dot_dimension_numbers<[1], [0], [0], [1], [0, 0, 1, 1], [], []>} : vector<2x16xf32>, vector<16x64xf32>, vector<2x64xf32> -> vector<2x64xf32>
    %81 = vector.shape_cast %22 : vector<16x128xf32> to vector<2x8x128xf32>
    %82 = vector.extract_strided_slice %81 {offsets = [0, 0, 0], sizes = [2, 1, 128], strides = [1, 1, 1]} : vector<2x8x128xf32> to vector<2x1x128xf32>
    %83 = vector.shape_cast %82 : vector<2x1x128xf32> to vector<2x128xf32>
    %cst_28 = arith.constant dense<0.000000e+00> : vector<2x128xf32>
    %84 = tpu.matmul %80, %12, %cst_28 {dimension_numbers = #tpu.dot_dimension_numbers<[1], [0], [0], [1], [0, 0, 1, 1], [], []>} : vector<2x64xf32>, vector<64x128xf32>, vector<2x128xf32> -> vector<2x128xf32>
    %85 = arith.addf %84, %83 : vector<2x128xf32>
    %cst_29 = arith.constant 5.000000e-01 : f32
    %86 = vector.broadcast %cst_29 : f32 to vector<2x128xf32>
    %87 = arith.mulf %85, %86 : vector<2x128xf32>
    %c0_30 = arith.constant 0 : index
    %c0_31 = arith.constant 0 : index
    %88 = vector.load %arg3[%c0_30, %c0_31] : memref<2x128xf32, #tpu.memory_space<vmem>>, vector<2x128xf32>
    tpu.vector_store %arg3[%c0_30, %c0_31], %87 {strides = array<i32>} : memref<2x128xf32, #tpu.memory_space<vmem>>, vector<2x128xf32>,
    return
  }
}

</mosaic_0001>

<bundles_post_ra>
// kernel: ego_attention_network.1
= control target key start
LH: loop header
LB: loop body
LE: loop exit
PB: predicated region body
PF: predicated region fallthrough
CT: control target
= control target key end

     0   :  { %8 = vsyncpa [#allocation3], 0  ;;  %s1451_s0 = inlined_call_operand.hbm [shape: f32[2,8,8], index: 0, kind: input, shape index: {}]   ;;  %s1452_s1 = inlined_call_operand.hbm [shape: f32[16,128], index: 1, kind: input, shape index: {}]   ;;  %s1453_s2 = inlined_call_operand.hbm [shape: bf16[256,128], index: 2, kind: input, shape index: {}]   ;;  %s1454_s3 = inlined_call_operand.hbm [shape: f32[2,128], index: 3, kind: output, shape index: {}]  }
   0x1   :  { %9 = vsyncpa [#allocation6], 0 }
   0x2   :  { %10 = vsyncpa [#allocation4], 0  ;;  %s1313_s12 = smov [#allocation5]   ;;  %s1314_s14 = smov [#allocation2]  }
   0x3   :  { %s28_s13 = sshll.u32 %s1313_s12, 4  ;;  %s16_s15 = sshll.u32 %s1314_s14, 4  ;;  %s29_s13 = int_to_ptr.vmem [resolvable:$true] %s28_s13  ;;  %s17_s15 = int_to_ptr.vmem [resolvable:$true] %s16_s15 }
   0x4   :  { %s1235_s16 = scalar_lea.vmem %s29_s13, 256  ;;  %p1240_p1 = scmp.lt.s32.totalorder %s29_s13, %s29_s13 }
   0x5   :  { %p1236_p0 = scmp.ne.s32.totalorder %s29_s13, %s1235_s16  ;;  %p1241_p2 = scmp.lt.s32.totalorder %s1235_s16, %s1235_s16 }
   0x7   :  { %p1242_p3 = por %p1241_p2, %p1240_p1 }
   0x9   :  { %p1243_p4 = pnand %p1242_p3, %p1236_p0 }
   0xb   :  { %1246 = shalt.err (!%p1243_p4)
}
   0xc   :  { %s1315_s17 = smov 128   ;;  %s1316_s18 = smov 8  }
   0xd   :  { %34 = dma.hbm_to_vmem [thread:$0]  %s1452_s1, 256, %s29_s13, [#allocation6], %s1315_s17, %s1315_s17, %s1316_s18  }
   0xe   :  { %s1255_s21 = scalar_lea.vmem %s17_s15, 256  ;;  %p1260_p6 = scmp.lt.s32.totalorder %s17_s15, %s17_s15 }
   0xf   :  { %p1256_p5 = scmp.ne.s32.totalorder %s17_s15, %s1255_s21  ;;  %p1261_p7 = scmp.lt.s32.totalorder %s1255_s21, %s1255_s21 }
  0x11   :  { %p1262_p8 = por %p1261_p7, %p1260_p6 }
  0x13   :  { %p1263_p9 = pnand %p1262_p8, %p1256_p5 }
  0x15   :  { %1266 = shalt.err (!%p1263_p9)
}
  0x16   :  { %22 = dma.hbm_to_vmem [thread:$0]  %s1451_s0, 256, %s17_s15, [#allocation3], %s1315_s17, %s1315_s17, %s1316_s18  }
  0x17   :  { %s1317_s24 = smov [#allocation7]  }
  0x18   :  { %s40_s25 = sshll.u32 %s1317_s24, 4  ;;  %s41_s25 = int_to_ptr.vmem [resolvable:$true] %s40_s25 }
  0x19   :  { %s1275_s26 = scalar_lea.vmem %s41_s25, 2048  ;;  %p1280_p11 = scmp.lt.s32.totalorder %s41_s25, %s41_s25 }
  0x1a   :  { %p1276_p10 = scmp.ne.s32.totalorder %s41_s25, %s1275_s26  ;;  %p1281_p12 = scmp.lt.s32.totalorder %s1275_s26, %s1275_s26 }
  0x1c   :  { %p1282_p13 = por %p1281_p12, %p1280_p11 }
  0x1e   :  { %p1283_p0 = pnand %p1282_p13, %p1276_p10 }
  0x20   :  { %1286 = shalt.err (!%p1283_p0)
}
  0x21   :  { %s1318_s1 = smov 64   ;;  %s1319_s27 = smov 4  }
  0x22   :  { %46 = dma.hbm_to_vmem [thread:$0]  %s1453_s2, 2048, %s41_s25, [#allocation6], %s1318_s1, %s1318_s1, %s1319_s27  }
  0x23   :  { %1307 = dma.done.wait [#allocation3], 256  }
  0x24   :  { %1308 = vsyncadd [#allocation3], 4294967040 }
  0x25   :  { %1309 = dma.done.wait [#allocation6], 2304  }
  0x26   :  { %1310 = vsyncadd [#allocation6], 4294964992  ;;  %vm131_vm0 = vcmask 64512   ;;  %v58_v0 = vld [vmem:[#allocation5] sm:$0xff]  ;;  %v1355_v1 = vld [vmem:[#allocation2] sm:$0xff]  ;;  %vm339_vm4 = vcmask 523264  }
  0x27   :  { %v1357_v2 = vld [vmem:[#allocation2 + $0x8] sm:$0xff]  ;;  %1092 = vmatprep.subr.mxu1 %v58_v0  ;;  %1094 = vmatprep.mubr.msk.f32.mxu1 %vm131_vm0, %v1355_v1  ;;  %v1024_v3 = vld [vmem:[#allocation7 + $0x38] sm:$0xff]   ;;  %v1023_v4 = vld [vmem:[#allocation7 + $0x30] sm:$0xff]   ;;  %vm622_vm2 = vcmp.lt.f32.partialorder %v1355_v1, 0.5  ;;  %vm681_vm6 = vcmask 1043456   ;;  %vm636_vm8 = vcmask 31744  }
  0x28   :  { %1093 = vmatpush3.msra.mxu1 %v58_v0  ;;  %v985_v5 = vunpack.c.h.bf16 %v1024_v3  ;;  %v984_v6 = vunpack.c.l.bf16 %v1024_v3  ;;  %v981_v7 = vunpack.c.h.bf16 %v1023_v4  ;;  %v1022_v8 = vld [vmem:[#allocation7 + $0x28] sm:$0xff]   ;;  %v980_v9 = vunpack.c.l.bf16 %v1023_v4  ;;  %v1021_v11 = vld [vmem:[#allocation7 + $0x20] sm:$0xff]   ;;  %v1020_v14 = vld [vmem:[#allocation7 + $0x18] sm:$0xff]   ;;  %s1323_s0 = smov [#allocation8]  }
  0x29   :  { %1095 = vmatmul.mubr.msk.f32.vlgmr.msra.gmra.mxu1 %vm131_vm0, %v1357_v2  ;;  %v977_v10 = vunpack.c.h.bf16 %v1022_v8  ;;  %v976_v12 = vunpack.c.l.bf16 %v1022_v8  ;;  %v973_v13 = vunpack.c.h.bf16 %v1021_v11  ;;  %v972_v15 = vunpack.c.l.bf16 %v1021_v11  ;;  %v1019_v17 = vld [vmem:[#allocation7 + $0x10] sm:$0xff]   ;;  %v1018_v21 = vld [vmem:[#allocation7 + $0x8] sm:$0xff]   ;;  %v955_v24 = vld [vmem:[#allocation7] sm:$0xff]   ;;  %s928_s2 = sshll.u32 %s1323_s0, 4  ;;  %s929_s2 = int_to_ptr.vmem [resolvable:$true] %s928_s2 }
  0x2a   :  { %1097 = vmatprep.subr.mxu1 %v985_v5  ;;  %v969_v16 = vunpack.c.h.bf16 %v1020_v14  ;;  %v968_v18 = vunpack.c.l.bf16 %v1020_v14  ;;  %v965_v19 = vunpack.c.h.bf16 %v1019_v17  ;;  %v964_v20 = vunpack.c.l.bf16 %v1019_v17  ;;  %v938_v27 = vld [vmem:[#allocation5 + $0x8] ss:$0 sm:$0xff]  ;;  %v1371_v37 = vld [vmem:[#allocation7 + $0x70] sm:$0xff]   ;;  %v1377_v39 = vld [vmem:[#allocation7 + $0x68] sm:$0xff]   ;;  %s1287_s30 = scalar_lea.vmem %s929_s2, 32  ;;  %p1292_p2 = scmp.lt.s32.totalorder %s929_s2, %s929_s2 }
  0x2b   :  { %1098 = vmatpush3.msra.mxu1 %v985_v5  ;;  %v961_v22 = vunpack.c.h.bf16 %v1018_v21  ;;  %v960_v23 = vunpack.c.l.bf16 %v1018_v21  ;;  %v957_v25 = vunpack.c.h.bf16 %v955_v24  ;;  %v956_v26 = vunpack.c.l.bf16 %v955_v24  ;;  %v1361_v34 = vld [vmem:[#allocation7 + $0x78] sm:$0xff]   ;;  %v1383_v41 = vld [vmem:[#allocation7 + $0x60] sm:$0xff]   ;;  %v1027_v44 = vld [vmem:[#allocation7 + $0x50] sm:$0xff]   ;;  %p1288_p1 = scmp.ne.s32.totalorder %s929_s2, %s1287_s30  ;;  %p1293_p3 = scmp.lt.s32.totalorder %s1287_s30, %s1287_s30 }
  0x2c   :  { %1099 = vmatprep.subr.mxu1 %v984_v6  ;;  %v1017_v35 = vunpack.c.h.bf16 %v1361_v34  ;;  %v1016_v36 = vunpack.c.l.bf16 %v1361_v34  ;;  %v1012_v38 = vunpack.c.l.bf16 %v1371_v37  ;;  %v1008_v40 = vunpack.c.l.bf16 %v1377_v39  ;;  %v1028_v43 = vld [vmem:[#allocation7 + $0x58] sm:$0xff]   ;;  %v1026_v48 = vld [vmem:[#allocation7 + $0x48] sm:$0xff]   ;;  %v1025_v51 = vld [vmem:[#allocation7 + $0x40] sm:$0xff]  }
  0x2d   :  { %1100 = vmatpush3.msra.mxu1 %v984_v6  ;;  %v1004_v42 = vunpack.c.l.bf16 %v1383_v41  ;;  %v1000_v45 = vunpack.c.l.bf16 %v1028_v43  ;;  %v1001_v46 = vunpack.c.h.bf16 %v1028_v43  ;;  %v997_v47 = vunpack.c.h.bf16 %v1027_v44  ;;  %v941_v57 = vld [vmem:[#allocation5 + $0x9] ss:$0 sm:$0xff]  ;;  %v61_v21 = vld [vmem:[#allocation5 + $0xa] sm:$0xf]  ;;  %p1294_p4 = por %p1293_p3, %p1292_p2 }
  0x2e   :  { %1101 = vmatprep.subr.mxu1 %v981_v7  ;;  %443 = vrot.lane.b32.xlu1 %v1017_v35, %s1318_s1  ;;  %v996_v49 = vunpack.c.l.bf16 %v1027_v44  ;;  %v993_v50 = vunpack.c.h.bf16 %v1026_v48  ;;  %v992_v52 = vunpack.c.l.bf16 %v1026_v48  ;;  %v989_v53 = vunpack.c.h.bf16 %v1025_v51 }
  0x2f   :  { %1102 = vmatpush3.msra.mxu1 %v981_v7  ;;  %1132 = vmatprep.subr.mxu0 %v1001_v46  ;;  %v988_v54 = vunpack.c.l.bf16 %v1025_v51  ;;  %v1013_v63 = vunpack.c.h.bf16 %v1371_v37  ;;  %v1009_v0 = vunpack.c.h.bf16 %v1377_v39  ;;  %vm623_vm1 = vcmp.lt.f32.partialorder %v1357_v2, 0.5  ;;  %p1295_p5 = pnand %p1294_p4, %p1288_p1 }
  0x30   :  { %1103 = vmatprep.subr.mxu1 %v980_v9  ;;  %1133 = vmatpush3.msra.mxu0 %v1001_v46  ;;  %v1320_v3 = vmov 0   ;;  %v1005_v5 = vunpack.c.h.bf16 %v1383_v41  ;;  %v296_v2 = vlaneseq  ;;  %vm1322_vm10 = vmmov 0  }
  0x31   :  { %1104 = vmatpush3.msra.mxu1 %v980_v9  ;;  %1134 = vmatprep.subr.mxu0 %v1000_v45  ;;  %v625_v4 = vsel %vm623_vm1, 1, %v1320_v3  ;;  %v624_v6 = vsel %vm622_vm2, 1, %v1320_v3  ;;  %vm769_vm11 = vcmask 130048   ;;  %vm844_vm12 = vcmask 1041409  }
  0x32   :  { %1105 = vmatprep.subr.mxu1 %v977_v10  ;;  %441 = vrot.lane.b32.xlu1 %v1016_v36, %s1318_s1  ;;  %v297_v7 = vshrl.u32 %v296_v2, 7 }
  0x33   :  { %1106 = vmatpush3.msra.mxu1 %v977_v10  ;;  %1135 = vmatpush3.msra.mxu0 %v1000_v45 }
  0x34   :  { %1107 = vmatprep.subr.mxu1 %v976_v12  ;;  %1136 = vmatprep.subr.mxu0 %v997_v47  ;;  %v303_v8 = vand.u32 7, %v297_v7  ;;  %v298_v9 = vadd.s32 8, %v297_v7  ;;  %v530_v24 = vsub.s32 0, %v297_v7 }
  0x35   :  { %1108 = vmatpush3.msra.mxu1 %v976_v12  ;;  %1137 = vmatpush3.msra.mxu0 %v997_v47 }
  0x36   :  { %1109 = vmatprep.subr.mxu1 %v973_v13  ;;  %437 = vrot.lane.b32.xlu1 %v1012_v38, %s1318_s1  ;;  %vm323_vm3 = vcmp.eq.s32.totalorder %v303_v8, 0  ;;  %v310_v10 = vand.u32 7, %v298_v9 }
  0x37   :  { %1110 = vmatpush3.msra.mxu1 %v973_v13  ;;  %1138 = vmatprep.subr.mxu0 %v996_v49 }
  0x38   :  { %1111 = vmatprep.subr.mxu1 %v972_v15  ;;  %1139 = vmatpush3.msra.mxu0 %v996_v49  ;;  %vm324_vm5 = vcmp.eq.s32.totalorder %v310_v10, 0 }
  0x39   :  { %1112 = vmatpush3.msra.mxu1 %v972_v15  ;;  %1140 = vmatprep.subr.mxu0 %v993_v50 }
  0x3a   :  { %1113 = vmatprep.subr.mxu1 %v969_v16  ;;  %433 = vrot.lane.b32.xlu1 %v1008_v40, %s1318_s1 }
  0x3b   :  { %1114 = vmatpush3.msra.mxu1 %v969_v16  ;;  %1141 = vmatpush3.msra.mxu0 %v993_v50 }
  0x3c   :  { %1115 = vmatprep.subr.mxu1 %v968_v18  ;;  %1142 = vmatprep.subr.mxu0 %v992_v52 }
  0x3d   :  { %1116 = vmatpush3.msra.mxu1 %v968_v18  ;;  %1143 = vmatpush3.msra.mxu0 %v992_v52 }
  0x3e   :  { %1117 = vmatprep.subr.mxu1 %v965_v19  ;;  %429 = vrot.lane.b32.xlu1 %v1004_v42, %s1318_s1 }
  0x3f   :  { %1118 = vmatpush3.msra.mxu1 %v965_v19  ;;  %1144 = vmatprep.subr.mxu0 %v989_v53 }
  0x40   :  { %1119 = vmatprep.subr.mxu1 %v964_v20  ;;  %1145 = vmatpush3.msra.mxu0 %v989_v53 }
  0x41   :  { %1120 = vmatpush3.msra.mxu1 %v964_v20  ;;  %1146 = vmatprep.subr.mxu0 %v988_v54 }
  0x42   :  { %1121 = vmatprep.subr.mxu1 %v961_v22  ;;  %1147 = vmatpush3.msra.mxu0 %v988_v54 }
  0x43   :  { %1122 = vmatpush3.msra.mxu1 %v961_v22  ;;  %1218 = vset.pattern.permute.xlu1 %v1320_v3 }
  0x44   :  { %1123 = vmatprep.subr.mxu1 %v960_v23  ;;  %1217 = vset.pattern.permute.xlu0 %v1320_v3 }
  0x45   :  { %1124 = vmatpush3.msra.mxu1 %v960_v23  ;;  %630 = vperm.xlu1 %1218, %v625_v4  }
  0x46   :  { %1125 = vmatprep.subr.mxu1 %v957_v25 }
  0x47   :  { %1126 = vmatpush3.msra.mxu1 %v957_v25 }
  0x48   :  { %1127 = vmatprep.subr.mxu1 %v956_v26 }
  0x49   :  { %1128 = vmatpush3.msra.mxu1 %v956_v26 }
  0x4a   :  { %1170 = vmatprep.subr.msk.mxu1 %vm339_vm4, %v61_v21 }
  0xa0   :  { %v444_v55 = vpop.permute.xlu1 %443 }
  0xa1   :  { %1151 = vmatprep.subr.mxu0 %v444_v55 }
  0xa4   :  { %v442_v11 = vpop.permute.xlu1 %441 }
  0xa8   :  { %v438_v15 = vpop.permute.xlu1 %437 }
  0xac   :  { %v434_v17 = vpop.permute.xlu1 %433 }
  0xb0   :  { %v430_v20 = vpop.permute.xlu1 %429 }
  0xe9   :  { %v1096_v28 = vpop.f32.mrf.mxu1 }
  0xea   :  { %v210_v29 = vadd.f32 %v1096_v28, %v938_v27 }
  0xeb   :  { %v204_v30 = vpop.f32.mrf.mxu1 }
  0xec   :  { %v205_v31 = vadd.f32 %v938_v27, %v204_v30  ;;  %v214_v33 = vmax.f32 %v210_v29, 0.0 }
  0xee   :  { %v213_v32 = vmax.f32 %v205_v31, 0.0  ;;  %v631_v31 = vpop.permute.xlu1 %630 }
  0xef   :  { %vm633_vm7 = vcmp.eq.s32.totalorder %v631_v31, 1 }
  0xf0   :  { %1129 = vmatprep.mubr.f32.mxu1 %v213_v32 }
  0xf1   :  { %1130 = vmatmul.mubr.f32.vlgmr.msra.gmra.mxu1 %v214_v33 }
  0xf2   :  { %1171 = vmatpush3.xpose.msk.msra.mxu1 %vm339_vm4, %v61_v21 }
  0xf3   :  { %1175 = vmatprep.subr.msk.mxu1 %vm681_vm6, %v61_v21 }
 0x1b1   :  { %v1131_v56 = vpop.f32.mrf.mxu1 }
 0x1b2   :  { %v291_v60 = vadd.f32 %v1131_v56, %v941_v57 }
 0x1b3   :  { %v285_v58 = vpop.f32.mrf.mxu1 }
 0x1b4   :  { %v286_v59 = vadd.f32 %v941_v57, %v285_v58  ;;  %v1393_v62 = vmax.f32 %v291_v60, 0.0 }
 0x1b6   :  { %v1389_v61 = vmax.f32 %v286_v59, 0.0 }
 0x1b8   :  { %331 = vrot.lane.b32.xlu0 %v1389_v61, %s1318_s1 }
 0x1bc   :  { %333 = vrot.lane.b32.xlu0 %v1393_v62, %s1318_s1 }
 0x1c0   :  { %439 = vrot.lane.b32.xlu0 %v1013_v63, %s1318_s1 }
 0x1c4   :  { %435 = vrot.lane.b32.xlu0 %v1009_v0, %s1318_s1 }
 0x1c8   :  { %431 = vrot.lane.b32.xlu0 %v1005_v5, %s1318_s1 }
 0x1cc   :  { %627 = vperm.xlu0 %1217, %v624_v6  }
 0x22a   :  { %v332_v12 = vpop.permute.xlu0 %331 }
 0x22b   :  { %v337_v13 = vsel %vm323_vm3, %v1389_v61, %v332_v12 }
 0x22c   :  { %1148 = vmatprep.mubr.msk.f32.mxu0 %vm339_vm4, %v337_v13 }
 0x22e   :  { %v334_v1 = vpop.permute.xlu0 %333 }
 0x22f   :  { %v338_v14 = vsel %vm324_vm5, %v1393_v62, %v334_v1 }
 0x230   :  { %1149 = vmatmul.mubr.msk.f32.vlgmr.msra.gmra.mxu0 %vm339_vm4, %v338_v14 }
 0x231   :  { %1152 = vmatpush3.msra.mxu0 %v444_v55  ;;  %1167 = vmatprep.mubr.msk.f32.mxu0 %vm339_vm4, %v337_v13 }
 0x232   :  { %1153 = vmatprep.subr.mxu0 %v442_v11  ;;  %v440_v16 = vpop.permute.xlu0 %439 }
 0x233   :  { %1154 = vmatpush3.msra.mxu0 %v442_v11 }
 0x234   :  { %1155 = vmatprep.subr.mxu0 %v440_v16 }
 0x235   :  { %1156 = vmatpush3.msra.mxu0 %v440_v16 }
 0x236   :  { %1157 = vmatprep.subr.mxu0 %v438_v15  ;;  %v436_v18 = vpop.permute.xlu0 %435 }
 0x237   :  { %1158 = vmatpush3.msra.mxu0 %v438_v15 }
 0x238   :  { %1159 = vmatprep.subr.mxu0 %v436_v18 }
 0x239   :  { %1160 = vmatpush3.msra.mxu0 %v436_v18 }
 0x23a   :  { %1161 = vmatprep.subr.mxu0 %v434_v17  ;;  %v432_v19 = vpop.permute.xlu0 %431 }
 0x23b   :  { %1162 = vmatpush3.msra.mxu0 %v434_v17 }
 0x23c   :  { %1163 = vmatprep.subr.mxu0 %v432_v19 }
 0x23d   :  { %1164 = vmatpush3.msra.mxu0 %v432_v19 }
 0x23e   :  { %1165 = vmatprep.subr.mxu0 %v430_v20 }
 0x23f   :  { %1166 = vmatpush3.msra.mxu0 %v430_v20 }
 0x240   :  { %1168 = vmatmul.mubr.msk.f32.vlgmr.msra.gmra.mxu0 %vm339_vm4, %v338_v14 }
 0x247   :  { %v628_v32 = vpop.permute.xlu0 %627 }
 0x248   :  { %vm632_vm9 = vcmp.eq.s32.totalorder %v628_v32, 1 }
 0x2f0   :  { %v1150_v22 = vpop.f32.mrf.mxu0 }
 0x2f1   :  { %763 = vrot.lane.b32.xlu1 %v1150_v22, %s1318_s1 }
 0x2f2   :  { %v412_v23 = vpop.f32.mrf.mxu0 }
 0x2f3   :  { %761 = vrot.lane.b32.xlu0 %v412_v23, %s1318_s1 }
 0x300   :  { %v1169_v25 = vpop.f32.mrf.mxu0 }
 0x301   :  { %v535_v26 = vrot.slane %v1169_v25, %v530_v24  ;;  %v1321_v25 = vmov 0.0  }
 0x302   :  { %v519_v27 = vpop.f32.mrf.mxu0  ;;  %1187 = vmatprep.subr.mxu0 %v1321_v25  ;;  %1203 = vmatprep.mubr.msk.f32.mxu0 %vm1322_vm10, %v1321_v25 }
 0x303   :  { %v531_v28 = vrot.slane %v519_v27, %v530_v24  ;;  %v537_v30 = vmul.f32 %v1150_v22, %v535_v26  ;;  %1188 = vmatpush3.msra.mxu0 %v1017_v35 }
 0x304   :  { %1189 = vmatprep.subr.mxu0 %v1321_v25 }
 0x305   :  { %v536_v29 = vmul.f32 %v531_v28, %v412_v23  ;;  %1190 = vmatpush3.msra.mxu0 %v1016_v36 }
 0x306   :  { %1191 = vmatprep.subr.mxu0 %v1321_v25 }
 0x307   :  { %1172 = vmatprep.mubr.msk.f32.mxu1 %vm339_vm4, %v536_v29  ;;  %1192 = vmatpush3.msra.mxu0 %v1013_v63 }
 0x308   :  { %1173 = vmatmul.mubr.msk.f32.vlgmr.msra.gmra.mxu1 %vm339_vm4, %v537_v30  ;;  %1193 = vmatprep.subr.mxu0 %v1321_v25 }
 0x309   :  { %1176 = vmatpush3.msk.msra.mxu1 %vm681_vm6, %v61_v21  ;;  %1194 = vmatpush3.msra.mxu0 %v1012_v38 }
 0x30a   :  { %1180 = vmatprep.subr.mxu1 %v1321_v25  ;;  %1195 = vmatprep.subr.mxu0 %v1321_v25 }
 0x30b   :  { %1196 = vmatpush3.msra.mxu0 %v1009_v0  ;;  %v62_v0 = vld [vmem:[#allocation5 + $0xe] sm:$0x3] }
 0x30c   :  { %1197 = vmatprep.subr.mxu0 %v1321_v25 }
 0x30d   :  { %1198 = vmatpush3.msra.mxu0 %v1008_v40 }
 0x30e   :  { %1199 = vmatprep.subr.mxu0 %v1321_v25 }
 0x30f   :  { %1200 = vmatpush3.msra.mxu0 %v1005_v5  ;;  %v843_v5 = vrot.slane %v1393_v62, 7 }
 0x310   :  { %1201 = vmatprep.subr.mxu0 %v1321_v25 }
 0x311   :  { %1202 = vmatpush3.msra.mxu0 %v1004_v42  ;;  %v845_v41 = vsel %vm844_vm12, %v843_v5, %v1389_v61 }
 0x363   :  { %v764_v34 = vpop.permute.xlu1 %763 }
 0x365   :  { %v762_v37 = vpop.permute.xlu0 %761 }
 0x3c8   :  { %v1174_v33 = vpop.f32.mrf.mxu1 }
 0x3c9   :  { %v635_v43 = vsel %vm633_vm7, -1e+09, %v1174_v33 }
 0x3ca   :  { %v644_v44 = vsel %vm636_vm8, %v635_v43, -inf  ;;  %v613_v45 = vpop.f32.mrf.mxu1 }
 0x3cb   :  { %v645_v46 = vrot.slane %v644_v44, 4  ;;  %v634_v47 = vsel %vm632_vm9, -1e+09, %v613_v45 }
 0x3cc   :  { %v637_v48 = vsel %vm636_vm8, %v634_v47, -inf }
 0x3cd   :  { %v646_v49 = vmax.f32 %v644_v44, %v645_v46  ;;  %v638_v50 = vrot.slane %v637_v48, 4 }
 0x3cf   :  { %v647_v51 = vrot.slane %v646_v49, 2  ;;  %v639_v52 = vmax.f32 %v637_v48, %v638_v50 }
 0x3d1   :  { %v648_v53 = vmax.f32 %v646_v49, %v647_v51  ;;  %v640_v54 = vrot.slane %v639_v52, 2 }
 0x3d3   :  { %v649_v55 = vrot.slane %v648_v53, 1  ;;  %v641_v56 = vmax.f32 %v639_v52, %v640_v54 }
 0x3d5   :  { %v650_v57 = vmax.f32 %v648_v53, %v649_v55  ;;  %v642_v58 = vrot.slane %v641_v56, 1 }
 0x3d7   :  { %v652_v59 = vsub.f32 %v635_v43, %v650_v57  ;;  %v643_v60 = vmax.f32 %v641_v56, %v642_v58 }
 0x3d9   :  { %v655_v3 = vmul.f32 1.442695, %v652_v59  ;;  %v651_v4 = vsub.f32 %v634_v47, %v643_v60 }
 0x3db   :  { %1219 = vpow2.f32 %v655_v3  ;;  %v653_v6 = vmul.f32 1.442695, %v651_v4 }
 0x3dd   :  { %1221 = vpow2.f32 %v653_v6 }
 0x3e8   :  { %v1220_v2 = vpop.eup %1219 }
 0x3e9   :  { %v664_v7 = vsel %vm636_vm8, %v1220_v2, 0.0 }
 0x3ea   :  { %v1222_v8 = vpop.eup %1221  ;;  %v665_v9 = vrot.slane %v664_v7, 4 }
 0x3eb   :  { %v657_v10 = vsel %vm636_vm8, %v1222_v8, 0.0 }
 0x3ec   :  { %v666_v11 = vadd.f32 %v665_v9, %v664_v7  ;;  %v658_v12 = vrot.slane %v657_v10, 4 }
 0x3ee   :  { %v667_v13 = vrot.slane %v666_v11, 2  ;;  %v659_v1 = vadd.f32 %v658_v12, %v657_v10 }
 0x3f0   :  { %v668_v14 = vadd.f32 %v667_v13, %v666_v11  ;;  %v660_v15 = vrot.slane %v659_v1, 2 }
 0x3f2   :  { %v669_v16 = vrot.slane %v668_v14, 1  ;;  %v661_v17 = vadd.f32 %v660_v15, %v659_v1 }
 0x3f4   :  { %v670_v18 = vadd.f32 %v669_v16, %v668_v14  ;;  %v662_v19 = vrot.slane %v661_v17, 1 }
 0x3f6   :  { %v663_v20 = vadd.f32 %v662_v19, %v661_v17  ;;  %1223 = vrcp.f32 %v670_v18 }
 0x3f8   :  { %1225 = vrcp.f32 %v663_v20 }
 0x403   :  { %v1224_v21 = vpop.eup %1223 }
 0x404   :  { %v674_v24 = vmul.f32 %v1224_v21, %v1220_v2 }
 0x405   :  { %v1226_v22 = vpop.eup %1225 }
 0x406   :  { %v673_v23 = vmul.f32 %v1226_v22, %v1222_v8 }
 0x408   :  { %1177 = vmatprep.mubr.msk.f32.mxu1 %vm636_vm8, %v673_v23 }
 0x409   :  { %1178 = vmatmul.mubr.msk.f32.vlgmr.msra.gmra.mxu1 %vm636_vm8, %v674_v24 }
 0x40a   :  { %1184 = vmatprep.mubr.msk.f32.mxu1 %vm1322_vm10, %v1321_v25 }
 0x4c9   :  { %v1179_v35 = vpop.f32.mrf.mxu1 }
 0x4ca   :  { %v768_v36 = vmul.f32 %v1179_v35, %v764_v34 }
 0x4cb   :  { %v750_v38 = vpop.f32.mrf.mxu1 }
 0x4cc   :  { %v767_v63 = vmul.f32 %v762_v37, %v750_v38  ;;  %1181 = vmatpush3.msra.mxu1 %v768_v36 }
 0x4cd   :  { %1182 = vmatprep.subr.mxu1 %v1321_v25 }
 0x4ce   :  { %1183 = vmatpush3.msra.mxu1 %v767_v63 }
 0x4cf   :  { %1185 = vmatmul.mubr.msk.f32.vlgmr.msra.gmra.mxu1 %vm769_vm11, %v62_v0 }
 0x58f   :  { %v839_v39 = vpop.f32.mrf.mxu1 }
 0x590   :  { %1204 = vmatmul.mubr.msk.f32.vlgmr.msra.gmra.mxu0 %vm339_vm4, %v839_v39 }
 0x591   :  { %v1186_v40 = vpop.f32.mrf.mxu1 }
 0x650   :  { %v916_v42 = vpop.f32.mrf.mxu0 }
 0x651   :  { %v917_v26 = vadd.f32 %v916_v42, %v845_v41 }
 0x652   :  { %v1205_v27 = vpop.f32.mrf.mxu0 }
 0x653   :  { %v920_v28 = vmul.f32 0.5, %v917_v26 }
 0x655   :  { %921 = vst [vmem:[#allocation8] sm:$0x3] %v920_v28 }
 0x656   :  { %1298 = shalt.err (!%p1295_p5)
}
 0x657   :  { %931 = dma.vmem_to_hbm [thread:$0]  %s929_s2, 32, %s1454_s3, [#allocation4]  }
 0x658   :  { %1311 = dma.done.wait [#allocation4], 32  }
 0x659   :  { %1312 = vsyncadd [#allocation4], 4294967264 }
 0x65a   :  { %935 = vsyncpa [#allocation3], 1 }
 0x65b   :  { %936 = vsyncpa [#allocation6], 1 }
 0x65c   :  { %937 = vsyncpa [#allocation4], 1 }

</bundles_post_ra>
